<compile_context>
chip_gen: v7x
topology: tpu7x:2x2x1
jax: 0.10.0
libtpu: 0.0.40
codegen_flags: <defaults>
</compile_context>

<pallas_src>
import math
import functools

import jax
import jax.numpy as jnp
from jax.experimental import pallas as pl
from jax.experimental.pallas import tpu as pltpu


def _pair(v):
    if isinstance(v, (tuple, list)):
        return tuple(v)
    return (v, v)


def _pick_batch_block(n, ho, target_m=256):
    """Largest per-step batch block that (a) divides N, (b) leaves >= 2 grid
    steps (so the BlockSpec pipeline double-buffers / megacore can shard),
    and (c) keeps the matmul M = nblk*Ho <= target_m.  Falls back to 1."""
    best = None
    for d in range(1, n + 1):
        if n % d == 0 and (n // d) >= 2 and d * ho <= target_m:
            best = d
    return 1 if best is None else best


def _build_banded_weight(weight_oihw, W, Wo, sw, pw, dtype):
    """Lowered conv weight with KH *and* (kw, ci) folded into one K axis.

    band[kh*W*Cin + w*Cin + ci, j*Cout + co] = weight[co, ci, kh, kw]
      where  w == j*sw + kw - pw   (and zero if no kw maps there).
    Out-of-range taps (into the zero padding) simply have no selected column,
    so no W padding of the activation is needed.
    """
    Cout, Cin, KH, KW = weight_oihw.shape
    wt = jnp.transpose(weight_oihw, (2, 3, 1, 0)).astype(jnp.float32)  # (KH,KW,Cin,Cout)
    w_pos = jnp.arange(W)[None, None, :]                                # (1, 1, W)
    tap_pos = (jnp.arange(Wo)[None, :, None] * sw
               + jnp.arange(KW)[:, None, None] - pw)                    # (KW, Wo, 1)
    sel = (w_pos == tap_pos).astype(jnp.float32)                        # (KW, Wo, W)
    band = jnp.einsum("hkco,kjw->hwcjo", wt, sel)                       # (KH, W, Cin, Wo, Cout)
    return band.reshape(KH * W * Cin, Wo * Cout).astype(dtype)


def _conv2d_kernel(x_ref, band_ref, bias_ref, o_ref, *, KH, stride_h):
    # x_ref:    (Nblk, Hp, W*Cin)       H-padded, channels-minor input rows (f32)
    # band_ref: (KH*W*Cin, Wo*Cout)     fused banded weight (bf16)
    # bias_ref: (1, Wo*Cout)            bias tiled along the output lanes (f32)
    # o_ref:    (Nblk, Ho, Wo*Cout)     lane-dense output slab
    Nblk, Hp, WC = x_ref.shape
    _, Ho, OC = o_ref.shape
    span = stride_h * (Ho - 1) + 1

    # Build the fused-K LHS from per-kh *ref* slices (no whole-block load).
    pieces = []
    for kh in range(KH):  # static unroll, KH is tiny (3)
        if stride_h == 1:
            rows = x_ref[:, pl.ds(kh, Ho), :]                      # (Nblk, Ho, WC)
        else:
            rows = jax.lax.slice(
                x_ref[:, pl.ds(kh, span), :],
                (0, 0, 0), (Nblk, span, WC), (1, stride_h, 1),
            )                                                      # (Nblk, Ho, WC)
        pieces.append(rows.reshape(Nblk * Ho, WC))                 # major-dim merge only
    a = jnp.concatenate(pieces, axis=-1).astype(jnp.bfloat16)      # (M, KH*WC) bf16

    # Single MXU contraction, f32 accumulate; bias + cast in f32.
    res = jnp.dot(a, band_ref[...], preferred_element_type=jnp.float32)  # (M, OC)
    res = res + bias_ref[...]                                            # (1, OC) broadcast
    o_ref[...] = res.reshape(Nblk, Ho, OC).astype(o_ref.dtype)


def conv2d_pallas(x_nchw, weight_oihw, bias=None, stride=1, padding=0):
    """F.conv2d(x, w, b, stride, padding, dilation=1, groups=1), zero padding."""
    N, Cin, H, W = x_nchw.shape
    Cout, Cin_w, KH, KW = weight_oihw.shape
    assert Cin == Cin_w, "groups != 1 not supported"
    sh, sw = _pair(stride)
    ph, pw = _pair(padding)

    Hp = H + 2 * ph
    Ho = (Hp - KH) // sh + 1
    Wo = (W + 2 * pw - KW) // sw + 1
    dtype = x_nchw.dtype
    WC = W * Cin
    OC = Wo * Cout

    # Activation layout pre-pass: NCHW -> H-padded NHWC, flattened to
    # (N, Hp, W*Cin).  (Transpose + pad fuse into one XLA pass; no W pad.)
    x = jnp.transpose(x_nchw, (0, 2, 3, 1))
    x = jnp.pad(x, ((0, 0), (ph, ph), (0, 0), (0, 0)))
    x = x.reshape(N, Hp, WC)

    # Tiny static parameter preprocessing: fused bf16 band + lane-tiled bias.
    band = _build_banded_weight(weight_oihw, W, Wo, sw, pw, jnp.bfloat16)  # (KH*WC, OC)
    if bias is None:
        bias = jnp.zeros((Cout,), jnp.float32)
    bias_row = jnp.tile(bias.astype(jnp.float32), Wo).reshape(1, OC)

    nblk = _pick_batch_block(N, Ho)
    grid = (N // nblk,)

    kernel = functools.partial(_conv2d_kernel, KH=KH, stride_h=sh)

    out = pl.pallas_call(
        kernel,
        out_shape=jax.ShapeDtypeStruct((N, Ho, OC), dtype),
        grid=grid,
        in_specs=[
            pl.BlockSpec((nblk, Hp, WC), lambda g: (g, 0, 0)),
            pl.BlockSpec((KH * WC, OC), lambda g: (0, 0)),
            pl.BlockSpec((1, OC), lambda g: (0, 0)),
        ],
        out_specs=pl.BlockSpec((nblk, Ho, OC), lambda g: (g, 0, 0)),
        compiler_params=pltpu.CompilerParams(dimension_semantics=("parallel",)),
    )(x, band, bias_row)

    # (N, Ho, Wo*Cout) -> (N, Ho, Wo, Cout) is a free reshape; the transpose
    # back to NCHW is the one unavoidable post-pass (module API is NCHW).
    return jnp.transpose(out.reshape(N, Ho, Wo, Cout), (0, 3, 1, 2))


def lecun_normal(key, shape, scale=1.0):
    """Mirror of lecun_normal_: trunc_normal(std=1, [-2,2]) * sqrt(scale/fan_in)."""
    fan_in = shape[1] * math.prod(shape[2:]) if len(shape) > 2 else shape[1]
    w = jax.random.truncated_normal(key, -2.0, 2.0, shape, jnp.float32)
    return w * math.sqrt(scale / fan_in)


if __name__ == "__main__":
    # Module config: Conv2d(in_channels=4, out_channels=8, kernel_size=3,
    #                        stride=1, padding=1, bias=True, init_scale=1.0)
    in_channels, out_channels, kernel_size = 4, 8, 3
    stride, padding = (1, 1), (1, 1)

    key = jax.random.PRNGKey(0)
    k_w, k_b, k_x = jax.random.split(key, 3)

    weight = lecun_normal(
        k_w, (out_channels, in_channels, kernel_size, kernel_size), scale=1.0
    )
    # The module inits bias to zeros; use a small nonzero bias here so the
    # bias path is actually exercised by the check.
    bias = 0.1 * jax.random.normal(k_b, (out_channels,), jnp.float32)

    x = jax.random.normal(k_x, (2, 4, 16, 16), jnp.float32)  # NCHW, like PyTorch

    out = conv2d_pallas(x, weight, bias, stride=stride, padding=padding)
    out = jax.block_until_ready(out)

    # Silent correctness check.  The kernel feeds the MXU bf16 operands with
    # f32 accumulation, so compare against an f32 conv of bf16-rounded
    # operands (this isolates accumulation-order noise, ~1e-6).
    xq = x.astype(jnp.bfloat16).astype(jnp.float32)
    wq = weight.astype(jnp.bfloat16).astype(jnp.float32)
    pad_ref = [(padding[0], padding[0]), (padding[1], padding[1])]
    ref = jax.lax.conv_general_dilated(
        xq, wq, window_strides=stride, padding=pad_ref,
        dimension_numbers=("NCHW", "OIHW", "NCHW"),
        precision=jax.lax.Precision.HIGHEST,
    ) + bias.reshape(1, -1, 1, 1)

    assert out.shape == ref.shape == (2, 8, 16, 16)
    assert jnp.allclose(out, ref, atol=2e-3, rtol=2e-3)

    print("KERNEL_OK")
</pallas_src>

<mosaic_0001>
module attributes {stable_mosaic.version = 11 : i64} {
  func.func @_conv2d_kernel(%arg0: i32, %arg1: memref<1x18x64xf32, #tpu.memory_space<vmem>>, %arg2: memref<192x128xbf16, #tpu.memory_space<vmem>>, %arg3: memref<1x128xf32, #tpu.memory_space<vmem>>, %arg4: memref<1x16x128xf32, #tpu.memory_space<vmem>>) attributes {dimension_semantics = [#tpu.dimension_semantics<parallel>], iteration_bounds = array<i64: 2>, scalar_prefetch = 0 : i64, scratch_operands = 0 : i64, tpu.core_type = #tpu.core_type<tc>, window_params = [{transform_indices = @transform_0, window_bounds = array<i64: 1, 18, 64>}, {pipeline_mode = #tpu.pipeline_mode<synchronous>, transform_indices = @transform_1, window_bounds = array<i64: 192, 128>}, {pipeline_mode = #tpu.pipeline_mode<synchronous>, transform_indices = @transform_2, window_bounds = array<i64: 1, 128>}, {transform_indices = @transform_3, window_bounds = array<i64: 1, 16, 128>}]} {
    %c0 = arith.constant 0 : index
    %c0_0 = arith.constant 0 : index
    %c0_1 = arith.constant 0 : index
    %0 = vector.load %arg1[%c0, %c0_0, %c0_1] : memref<1x18x64xf32, #tpu.memory_space<vmem>>, vector<1x16x64xf32>
    %1 = vector.shape_cast %0 : vector<1x16x64xf32> to vector<16x64xf32>
    %c0_2 = arith.constant 0 : index
    %c1 = arith.constant 1 : index
    %c0_3 = arith.constant 0 : index
    %2 = vector.load %arg1[%c0_2, %c1, %c0_3] : memref<1x18x64xf32, #tpu.memory_space<vmem>>, vector<1x16x64xf32>
    %3 = vector.shape_cast %2 : vector<1x16x64xf32> to vector<16x64xf32>
    %c0_4 = arith.constant 0 : index
    %c2 = arith.constant 2 : index
    %c0_5 = arith.constant 0 : index
    %4 = vector.load %arg1[%c0_4, %c2, %c0_5] : memref<1x18x64xf32, #tpu.memory_space<vmem>>, vector<1x16x64xf32>
    %5 = vector.shape_cast %4 : vector<1x16x64xf32> to vector<16x64xf32>
    %6 = tpu.concatenate %1, %3, %5 in 1 : vector<16x64xf32>, vector<16x64xf32>, vector<16x64xf32> -> vector<16x192xf32>
    %7 = arith.truncf %6 : vector<16x192xf32> to vector<16x192xbf16>
    %c0_6 = arith.constant 0 : index
    %c0_7 = arith.constant 0 : index
    %8 = vector.load %arg2[%c0_6, %c0_7] : memref<192x128xbf16, #tpu.memory_space<vmem>>, vector<192x128xbf16>
    %cst = arith.constant dense<0.000000e+00> : vector<16x128xf32>
    %9 = tpu.matmul %7, %8, %cst {dimension_numbers = #tpu.dot_dimension_numbers<[1], [0], [0], [1], [0, 0, 1, 1], [], []>} : vector<16x192xbf16>, vector<192x128xbf16>, vector<16x128xf32> -> vector<16x128xf32>
    %c0_8 = arith.constant 0 : index
    %c0_9 = arith.constant 0 : index
    %10 = vector.load %arg3[%c0_8, %c0_9] : memref<1x128xf32, #tpu.memory_space<vmem>>, vector<1x128xf32>
    %11 = vector.broadcast %10 : vector<1x128xf32> to vector<16x128xf32>
    %12 = arith.addf %9, %11 : vector<16x128xf32>
    %13 = vector.shape_cast %12 : vector<16x128xf32> to vector<1x16x128xf32>
    %c0_10 = arith.constant 0 : index
    %c0_11 = arith.constant 0 : index
    %c0_12 = arith.constant 0 : index
    %14 = vector.load %arg4[%c0_10, %c0_11, %c0_12] : memref<1x16x128xf32, #tpu.memory_space<vmem>>, vector<1x16x128xf32>
    tpu.vector_store %arg4[%c0_10, %c0_11, %c0_12], %13 {strides = array<i32>} : memref<1x16x128xf32, #tpu.memory_space<vmem>>, vector<1x16x128xf32>,
    return
  }
  func.func @transform_0(%arg0: i32) -> (i32, i32, i32) {
    %c0_i32 = arith.constant 0 : i32
    %c0_i32_0 = arith.constant 0 : i32
    %c0_i32_1 = arith.constant 0 : i32
    return %arg0, %c0_i32, %c0_i32_0 : i32, i32, i32
  }
  func.func @transform_1(%arg0: i32) -> (i32, i32) {
    %c0_i32 = arith.constant 0 : i32
    %c0_i32_0 = arith.constant 0 : i32
    %c0_i32_1 = arith.constant 0 : i32
    return %c0_i32, %c0_i32_0 : i32, i32
  }
  func.func @transform_2(%arg0: i32) -> (i32, i32) {
    %c0_i32 = arith.constant 0 : i32
    %c0_i32_0 = arith.constant 0 : i32
    %c0_i32_1 = arith.constant 0 : i32
    return %c0_i32, %c0_i32_0 : i32, i32
  }
  func.func @transform_3(%arg0: i32) -> (i32, i32, i32) {
    %c0_i32 = arith.constant 0 : i32
    %c0_i32_0 = arith.constant 0 : i32
    %c0_i32_1 = arith.constant 0 : i32
    return %arg0, %c0_i32, %c0_i32_0 : i32, i32, i32
  }
}

</mosaic_0001>

<bundles_post_ra>
// kernel: tpu_custom_call.1
= control target key start
LH: loop header
LB: loop body
LE: loop exit
PB: predicated region body
PF: predicated region fallthrough
CT: control target
= control target key end

     0   :  { %8 = vsyncpa [#allocation3], 0  ;;  %s819_s0 = inlined_call_operand.vmem [shape: f32[2,18,64], index: 0, kind: input, shape index: {}]   ;;  %s820_s1 = inlined_call_operand.hbm [shape: bf16[192,128], index: 1, kind: input, shape index: {}]   ;;  %s821_s2 = inlined_call_operand.vmem [shape: f32[1,128], index: 2, kind: input, shape index: {}]   ;;  %s822_s3 = inlined_call_operand.hbm [shape: f32[2,16,128], index: 3, kind: output, shape index: {}]  }
   0x1   :  { %9 = vsyncpa [#allocation4], 0 }
   0x2   :  { %11 = vsyncpa [#allocation4 + $0x1], 0  ;;  %s667_s12 = smov 0   ;;  %s669_s13 = smov 0  }
   0x3   :  { %s671_s14 = smov 0   ;;  %s673_s15 = smov 0  }
   0x4 LB: > { %s688_s16 = sadd.s32 4294967295, %s637_s15   ;;  %s441_s17 = sadd.s32 4294967294, %s637_s15   ;;  %s637_s15 = sphi %s673_s15, %s838_s15   ;;  %s633_s14 = sphi %s671_s14, %s837_s14   ;;  %s629_s13 = sphi %s669_s13, %s836_s13   ;;  %s625_s12 = sphi %s667_s12, %s835_s12  }
   0x5   : > { %s692_s18 = sadd.s32 1, %s637_s15   ;;  %s92_s19 = sadd.s32 1, %s633_s14 }
   0x6   : > { %s89_s20 = ssub.s32 %s637_s15, %s692_s18  ;;  %p102_p0 = scmp.ne.s32.totalorder %s633_s14, %s629_s13 }
   0x7   : > { %p90_p1 = scmp.eq.s32.totalorder %s89_s20, 0  ;;  %p103_p2 = scmp.eq.s32.totalorder %s688_s16, 1 }
   0x8   : > { %p108_p3 = scmp.ne.s32.totalorder %s629_s13, %s625_s12  ;;  %p109_p4 = scmp.eq.s32.totalorder %s441_s17, 1 }
   0x9   : > { %s703_s21 = scalar_select %p90_p1, %s633_s14, %s92_s19  }
   0xa   : > { %p705_p5 = por %p103_p2, %p102_p0  ;;  %p709_p6 = por %p109_p4, %p108_p3 }
   0xb   : > { %p442_p7 = scmp.ge.s32.totalorder %s637_s15, 1  ;;  %p116_p8 = scmp.lt.s32.totalorder %s637_s15, 3 }
   0xc   : > { %s826_s22 = scalar_select %p705_p5, 1, 0 }
   0xd   : > { %s827_s23 = scalar_select %p709_p6, 1, 0 }
   0xe   : > { %p823_p9 = scmp.eq.s32.totalorder %s688_s16, 0  ;;  %p716_p10 = pnand %p442_p7, %p116_p8 }
   0xf   : > { %s639_s25 = smov [#allocation2]   ;;  %s543_s30 = scalar_lea.hbm %s820_s1, 1536 }
  0x10   : > { %s828_s24 = scalar_select %p716_p10, 1, 0 }
  0x11   : > { %s128_s26 = sshll.u32 %s639_s25, 4  ;;  %p476_p11 = pneg %p716_p10  ;;  %s129_s26 = int_to_ptr.vmem [resolvable:$true] %s128_s26 }
  0x12   : > { %p544_p13 = scmp.ne.s32.totalorder %s820_s1, %s543_s30  ;;  %p550_p3 = scmp.lt.u32.totalorder %s543_s30, %s820_s1 }
  0x13   : > { %p724_p12 = pnand %p823_p9, %p476_p11 }
  0x15   : > { %p545_p0 = pneg %p724_p12 }
  0x17   : > { %p546_p1 = pnand %p545_p0, %p544_p13 }
  0x19   : > { %p547_p2 = pneg %p546_p1 }
  0x1b   : > { %p552_p4 = pnand %p550_p3, %p547_p2 }
  0x1d   : > { %555 = shalt.err (!%p552_p4)
}
  0x1e   : > { %s556_s8 = scalar_lea.vmem %s129_s26, 1536  ;;  %p564_p9 = scmp.lt.s32.totalorder %s129_s26, %s129_s26 }
  0x1f   : > { %p557_p7 = scmp.ne.s32.totalorder %s129_s26, %s556_s8  ;;  %p565_p6 = scmp.lt.s32.totalorder %s556_s8, %s556_s8 }
  0x21   : > { %p559_p8 = pnand %p557_p7, %p545_p0  ;;  %p566_p5 = por %p565_p6, %p564_p9 }
  0x23   : > { %p560_p11 = pneg %p559_p8 }
  0x25   : > { %p567_p10 = pnand %p566_p5, %p560_p11 }
  0x27   : > { %570 = shalt.err (!%p567_p10)
}
  0x28   : > { %s640_s9 = smov 64   ;;  %s641_s10 = smov 4  }
  0x29   : > { %479 = dma.hbm_to_vmem [thread:$0]  (!%p724_p12), %s820_s1, 1536, %s129_s26, [#allocation3], %s640_s9, %s640_s9, %s641_s10  }
  0x2a   : > { %p830_p13 = scmp.ne.s32.totalorder %s828_s24, 0 }
  0x2b   : > { %p831_p1 = scmp.eq.s32.totalorder (!%p830_p13), %s688_s16, 0 }
  0x2c   : > { %155 = sbr.rel (%p830_p13) target bundleno = 413 (0x19d), region = 32 }
  0x33   : > { %616 = dma.done.wait (%p831_p1), [#allocation3], 1536   ;;  %p832_p0 = pmov %p831_p1 }
  0x34   : > { %p179_p5 = scmp.lt.s32.totalorder %s688_s16, 1  ;;  %v642_v0 = vmov 0   ;;  %v531_v4 = vld [vmem:[#allocation2] sm:$0xff]   ;;  %s643_s24 = smov 64   ;;  %v532_v5 = vld [vmem:[#allocation2 + $0x8] sm:$0xff]   ;;  %v533_v6 = vld [vmem:[#allocation2 + $0x10] sm:$0xff]  }
  0x35   : > { %618 = vsyncadd (%p832_p0), [#allocation3], 4294965760  ;;  %310 = vmatprep.subr.bf16.mxu0 %v642_v0  ;;  %v534_v7 = vld [vmem:[#allocation2 + $0x18] sm:$0xff]   ;;  %v535_v11 = vld [vmem:[#allocation2 + $0x20] sm:$0xff]   ;;  %vm199_vm0 = vcmask 523264   ;;  %s176_s28 = sand.u32 1, %s629_s13  }
  0x36   : > { %s180_s19 = scalar_select %p179_p5, %s688_s16, 1  ;;  %311 = vmatpush1.bf16.msra.mxu0 %v531_v4  ;;  %v536_v12 = vld [vmem:[#allocation2 + $0x28] sm:$0xff]   ;;  %v537_v13 = vld [vmem:[#allocation2 + $0x30] sm:$0xff]   ;;  %v538_v14 = vld [vmem:[#allocation2 + $0x38] sm:$0xff]  }
  0x37   : > { %312 = vmatprep.subr.bf16.mxu0 %v642_v0  ;;  %v539_v15 = vld [vmem:[#allocation2 + $0x40] sm:$0xff]   ;;  %v540_v16 = vld [vmem:[#allocation2 + $0x48] sm:$0xff]   ;;  %v541_v17 = vld [vmem:[#allocation2 + $0x50] sm:$0xff]   ;;  %s447_s29 = sshll.u32 %s176_s28, 4  ;;  %s468_s7 = sshll.u32 %s688_s16, 8 }
  0x38   : > { %s469_s20 = smul.u32 24, %s180_s19  ;;  %v542_v18 = vld [vmem:[#allocation2 + $0x58] sm:$0xff]   ;;  %v449_v27 = vld [vmem:[%s821_s2] ss:$0 sm:$0xff]  ;;  %s178_s5 = scalar_lea.vmem [#allocation5], %s447_s29 }
  0x39   : > { %s367_s6 = sshll.u32 %s178_s5, 4  ;;  %s776_s10 = scalar_lea.hbm %s822_s3, %s468_s7  ;;  %s771_s6 = int_to_ptr.vmem [resolvable:$true] %s367_s6 }
  0x3a   : > { %s755_s26 = scalar_lea.vmem %s819_s0, %s469_s20  ;;  %313 = vmatpush1.bf16.msra.mxu0 %v532_v5  ;;  %s778_s11 = scalar_lea.sflag [#allocation4], %s176_s28 }
  0x3b   : > { %v187_v1 = vld [vmem:[%s755_s26 + $0x1] sm:$0xff]  ;;  %v188_v2 = vld [vmem:[%s755_s26 + $0x9] sm:$0xff]  ;;  %314 = vmatprep.subr.bf16.mxu0 %v642_v0  ;;  %s571_s16 = scalar_lea.vmem %s771_s6, 256  ;;  %p833_p9 = scmp.ne.s32.totalorder %s826_s22, 0 }
  0x3c   : > { %v526_v3 = vpack.i.bf16 %v188_v2, %v187_v1  ;;  %v189_v8 = vld [vmem:[%s755_s26 + $0x2] sm:$0xff]  ;;  %v190_v9 = vld [vmem:[%s755_s26 + $0xa] sm:$0xff]  ;;  %p572_p6 = scmp.ne.s32.totalorder %s771_s6, %s571_s16  ;;  %s644_s17 = smov [#allocation5]  }
  0x3d   : > { %v203_v10 = vpack.c.bf16 %v190_v9, %v189_v8  ;;  %v185_v20 = vld [vmem:[%s755_s26] sm:$0xff]  ;;  %v186_v21 = vld [vmem:[%s755_s26 + $0x8] sm:$0xff]  ;;  %s575_s19 = sshll.u32 %s644_s17, 4  ;;  %s576_s19 = int_to_ptr.vmem [resolvable:$false] %s575_s19 }
  0x3e   : > { %527 = vrot.lane.b32.xlu0 %v526_v3, %s643_s24  ;;  %315 = vmatpush1.bf16.msra.mxu0 %v533_v6  ;;  %p573_p10 = pnand %p572_p6, %p833_p9  ;;  %s577_s20 = scalar_lea.vmem %s576_s19, 512 }
  0x3f   : > { %316 = vmatprep.subr.bf16.mxu0 %v642_v0  ;;  %462 = vmatprep.mubr.msk.bf16.mxu0 %vm199_vm0, %v203_v10  ;;  %p578_p2 = scmp.lt.s32.totalorder %s771_s6, %s576_s19  ;;  %p579_p3 = scmp.lt.s32.totalorder %s577_s20, %s571_s16 }
  0x40   : > { %p574_p12 = pneg %p573_p10 }
  0x41   : > { %p580_p4 = por %p579_p3, %p578_p2 }
  0x42   : > { %317 = vmatpush1.bf16.msra.mxu0 %v534_v7 }
  0x43   : > { %318 = vmatprep.subr.bf16.mxu0 %v642_v0  ;;  %p581_p7 = pnand %p580_p4, %p574_p12 }
  0x46   : > { %319 = vmatpush1.bf16.msra.mxu0 %v535_v11 }
  0x47   : > { %320 = vmatprep.subr.bf16.mxu0 %v642_v0 }
  0x4a   : > { %321 = vmatpush1.bf16.msra.mxu0 %v536_v12 }
  0x4b   : > { %322 = vmatprep.subr.bf16.mxu0 %v642_v0 }
  0x4e   : > { %323 = vmatpush1.bf16.msra.mxu0 %v537_v13 }
  0x4f   : > { %324 = vmatprep.subr.bf16.mxu0 %v642_v0 }
  0x52   : > { %325 = vmatpush1.bf16.msra.mxu0 %v538_v14 }
  0x53   : > { %326 = vmatprep.subr.bf16.mxu0 %v642_v0 }
  0x56   : > { %327 = vmatpush1.bf16.msra.mxu0 %v539_v15 }
  0x57   : > { %328 = vmatprep.subr.bf16.mxu0 %v642_v0 }
  0x5a   : > { %329 = vmatpush1.bf16.msra.mxu0 %v540_v16 }
  0x5b   : > { %330 = vmatprep.subr.bf16.mxu0 %v642_v0 }
  0x5e   : > { %331 = vmatpush1.bf16.msra.mxu0 %v541_v17 }
  0x5f   : > { %332 = vmatprep.subr.bf16.mxu0 %v642_v0 }
  0x62   : > { %333 = vmatpush1.bf16.msra.mxu0 %v542_v18 }
  0xb0   : > { %v528_v19 = vpop.permute.xlu0 %527 }
  0xb1   : > { %v530_v22 = vunpack.i.h.bf16 %v528_v19  ;;  %v529_v23 = vunpack.i.l.bf16 %v528_v19 }
  0xb3   : > { %v200_v24 = vsel %vm199_vm0, %v185_v20, %v529_v23  ;;  %v201_v25 = vsel %vm199_vm0, %v186_v21, %v530_v22 }
  0xb4   : > { %v202_v26 = vpack.c.bf16 %v201_v25, %v200_v24 }
  0xb6   : > { %343 = vmatmul.mubr.bf16.vlgmr.msra.gmra.mrb[0].mxu0 %v202_v26 }
 0x189   : > { %v344_v28 = vpop.f32.mrb[0].mxu0 }
 0x18a   : > { %v345_v29 = vadd.f32 %v449_v27, %v344_v28  ;;  %v346_v30 = vpop.f32.mrb[1].mxu0 }
 0x18b   : > { %v347_v31 = vpop.f32.mrb[2].mxu0 }
 0x18c   : > { %351 = vst [vmem:[%s178_s5] sm:$0xff] %v345_v29  ;;  %v348_v32 = vadd.f32 %v449_v27, %v347_v31  ;;  %v349_v33 = vpop.f32.mrb[3].mxu0 }
 0x18e   : > { %352 = vst [vmem:[%s178_s5 + $0x8] sm:$0xff] %v348_v32 }
 0x18f   : > { %584 = shalt.err (!%p581_p7)
}
 0x190   : > { %s585_s25 = scalar_lea.hbm %s776_s10, 256  ;;  %s589_s24 = scalar_lea.hbm %s822_s3, 512 }
 0x191   : > { %p586_p8 = scmp.ne.s32.totalorder %s776_s10, %s585_s25  ;;  %p590_p1 = scmp.lt.u32.totalorder %s776_s10, %s822_s3 }
 0x192   : > { %p591_p0 = scmp.lt.u32.totalorder %s589_s24, %s585_s25  ;;  %p593_p6 = scmp.lt.u32.totalorder %s585_s25, %s776_s10 }
 0x193   : > { %p587_p11 = pnand %p586_p8, %p833_p9 }
 0x194   : > { %p592_p5 = por %p591_p0, %p590_p1 }
 0x195   : > { %p588_p13 = pneg %p587_p11 }
 0x196   : > { %p594_p10 = por %p593_p6, %p592_p5 }
 0x198   : > { %p595_p12 = pnand %p594_p10, %p588_p13 }
 0x19a   : > { %598 = shalt.err (!%p595_p12)
}
 0x19b   : > { %s645_s30 = smov 128   ;;  %s646_s4 = smov 8  }
 0x19c   : > { %474 = dma.vmem_to_hbm [thread:$0]  (%p833_p9), %s771_s6, 256, %s776_s10, %s778_s11, %s645_s30, %s645_s30, %s646_s4  }
 0x19d PF: > { %p486_p2 = scmp.ge.s32.totalorder %s637_s15, 2  ;;  %s382_s5 = sand.u32 1, %s625_s12  }
 0x19e   : > { %p834_p3 = scmp.ne.s32.totalorder %s827_s23, 0  ;;  %s383_s7 = scalar_lea.sflag [#allocation4], %s382_s5 }
 0x1a0   : > { %p481_p4 = pnand %p486_p2, %p834_p3 }
 0x1a2   : > { %620 = dma.done.wait (!%p481_p4), %s383_s7, 256  }
 0x1a3   : > { %622 = vsyncadd (!%p481_p4), %s383_s7, 4294967040  ;;  %p14_p7 = scmp.ge.s32.totalorder %s692_s18, 4   ;;  %s835_s12 = smov %s629_s13 }
 0x1a4   : > { %s836_s13 = smov %s633_s14  ;;  %s837_s14 = smov %s703_s21 }
 0x1a5   : > { %s838_s15 = smov %s692_s18  ;;  %16 = sbr.rel (!%p14_p7) target bundleno = 4 (0x4), region = 72 }
 0x1ac   :  { %388 = vsyncpa [#allocation3], 1 }
 0x1ad   :  { %390 = vsyncpa [#allocation3 + $0x1], 1 }
 0x1ae   :  { %391 = vsyncpa [#allocation4], 1 }
 0x1af   :  { %393 = vsyncpa [#allocation4 + $0x1], 1 }

</bundles_post_ra>
